<compile_context>
chip_gen: v7x
topology: tpu7x:2x2x1
jax: 0.10.0
libtpu: 0.0.40
codegen_flags: <defaults>
</compile_context>

<pallas_src>
import jax
import jax.numpy as jnp
from jax.experimental import pallas as pl
from jax.experimental.pallas import tpu as pltpu

_LANE = 128
_SUBLANE = 8
_TARGET_BLOCK_BYTES = 2 * 1024 * 1024  # ~2 MiB per block (f32)


def _pexp_kernel(alpha_ref, x_ref, o_ref):
    # alpha is a scalar held in SMEM; broadcast-multiply (VPU) then exp (EUP).
    alpha = alpha_ref[0]
    x = x_ref[...]
    # Low-precision inputs: compute in f32 (v5e EUP/VPU have no native bf16),
    # store back in the output dtype with an explicit cast.
    if x.dtype in (jnp.bfloat16, jnp.float16):
        x = x.astype(jnp.float32)
    o_ref[...] = jnp.exp(alpha.astype(x.dtype) * x).astype(o_ref.dtype)


def _choose_layout(total, itemsize):
    """Pick (lane_width, rows, tile_rows, padded_total) for a lane-dense slab."""
    target_block_elems = _TARGET_BLOCK_BYTES // max(int(itemsize), 1)

    # Pad (at most 127 elements) only if total is not a multiple of 128.
    padded = ((total + _LANE - 1) // _LANE) * _LANE

    # Widest lane dimension (multiple of 128) that divides the padded total.
    lane = _LANE
    for cand in (4096, 2048, 1024, 512, 256, 128):
        if padded % cand == 0:
            lane = cand
            break
    rows = padded // lane

    if rows <= _SUBLANE:
        # Full-extent sublane dim -> always a legal block shape.
        tile_rows = rows
    else:
        # Largest multiple of 8 rows that keeps the block near the budget.
        tile_rows = max(_SUBLANE,
                        (target_block_elems // lane) // _SUBLANE * _SUBLANE)
        tile_rows = min(tile_rows, (rows // _SUBLANE) * _SUBLANE)
    return lane, rows, tile_rows, padded


def parametrized_exp(x, alpha):
    """Elementwise y = exp(alpha * x), matching torch.exp(self.alpha * x)."""
    orig_shape = x.shape
    orig_dtype = x.dtype
    total = x.size

    lane, rows, tile_rows, padded = _choose_layout(
        total, jnp.dtype(orig_dtype).itemsize)

    x_flat = jnp.reshape(x, (-1,))
    if padded != total:
        # At most 127 padding elements (only when total % 128 != 0).
        x_flat = jnp.pad(x_flat, (0, padded - total))
    x2d = jnp.reshape(x_flat, (rows, lane))

    alpha_arr = jnp.asarray([alpha], dtype=jnp.float32)

    grid = (pl.cdiv(rows, tile_rows),)  # ragged last row-tile handled by Pallas
    out2d = pl.pallas_call(
        _pexp_kernel,
        out_shape=jax.ShapeDtypeStruct((rows, lane), orig_dtype),
        grid_spec=pltpu.PrefetchScalarGridSpec(
            num_scalar_prefetch=0,
            grid=grid,
            in_specs=[
                pl.BlockSpec(memory_space=pltpu.SMEM),               # alpha
                pl.BlockSpec((tile_rows, lane), lambda i: (i, 0)),   # x tile
            ],
            out_specs=pl.BlockSpec((tile_rows, lane), lambda i: (i, 0)),
        ),
        compiler_params=pltpu.CompilerParams(
            dimension_semantics=("parallel",),
        ),
    )(alpha_arr, x2d)

    out_flat = jnp.reshape(out2d, (-1,))
    if padded != total:
        out_flat = out_flat[:total]
    return jnp.reshape(out_flat, orig_shape)


if __name__ == "__main__":
    key = jax.random.PRNGKey(0)

    # Deterministic parameter init, matching nn.Parameter(torch.tensor(1.0)).
    # TODO(synk): ParamClamp (clamp alpha >= 0) only affects training-time
    # parametrization; the forward pass is exp(alpha * x) on the stored value.
    alpha = jnp.float32(1.0)

    # Small NCHW input consistent with the module's usage.
    x = jax.random.normal(key, (2, 4, 16, 16), dtype=jnp.float32)

    y = parametrized_exp(x, alpha)
    y = jax.block_until_ready(y)
    y_ref = jnp.exp(alpha * x)
    assert y.shape == x.shape
    assert jnp.allclose(y, y_ref, rtol=1e-6, atol=1e-6)

    # Extra tiny check: shape whose size is not a multiple of 128 (pad path).
    x2 = jax.random.normal(jax.random.PRNGKey(1), (3, 5, 7), dtype=jnp.float32)
    y2 = jax.block_until_ready(parametrized_exp(x2, jnp.float32(0.5)))
    assert jnp.allclose(y2, jnp.exp(0.5 * x2), rtol=1e-6, atol=1e-6)

    print("KERNEL_OK")
</pallas_src>

<mosaic_0001>
module attributes {stable_mosaic.version = 11 : i64} {
  func.func @_pexp_kernel(%arg0: i32, %arg1: memref<1xf32, #tpu.memory_space<smem>>, %arg2: memref<1x2048xf32, #tpu.memory_space<vmem>>, %arg3: memref<1x2048xf32, #tpu.memory_space<vmem>>) attributes {dimension_semantics = [#tpu.dimension_semantics<parallel>], iteration_bounds = array<i64: 1>, scalar_prefetch = 0 : i64, scratch_operands = 0 : i64, tpu.core_type = #tpu.core_type<tc>, window_params = [{transform_indices = @transform_0, window_bounds = array<i64: 1>}, {transform_indices = @transform_1, window_bounds = array<i64: 1, 2048>}, {transform_indices = @transform_2, window_bounds = array<i64: 1, 2048>}]} {
    %c0 = arith.constant 0 : index
    %0 = memref.load %arg1[%c0] : memref<1xf32, #tpu.memory_space<smem>>
    %c0_0 = arith.constant 0 : index
    %c0_1 = arith.constant 0 : index
    %1 = vector.load %arg2[%c0_0, %c0_1] : memref<1x2048xf32, #tpu.memory_space<vmem>>, vector<1x2048xf32>
    %2 = vector.broadcast %0 : f32 to vector<1x2048xf32>
    %3 = arith.mulf %2, %1 : vector<1x2048xf32>
    %4 = math.exp %3 : vector<1x2048xf32>
    %c0_2 = arith.constant 0 : index
    %c0_3 = arith.constant 0 : index
    %5 = vector.load %arg3[%c0_2, %c0_3] : memref<1x2048xf32, #tpu.memory_space<vmem>>, vector<1x2048xf32>
    tpu.vector_store %arg3[%c0_2, %c0_3], %4 {strides = array<i32>} : memref<1x2048xf32, #tpu.memory_space<vmem>>, vector<1x2048xf32>,
    return
  }
  func.func @transform_0(%arg0: i32) -> i32 {
    %c0_i32 = arith.constant 0 : i32
    %c0_i32_0 = arith.constant 0 : i32
    return %c0_i32 : i32
  }
  func.func @transform_1(%arg0: i32) -> (i32, i32) {
    %c0_i32 = arith.constant 0 : i32
    %c0_i32_0 = arith.constant 0 : i32
    return %arg0, %c0_i32 : i32, i32
  }
  func.func @transform_2(%arg0: i32) -> (i32, i32) {
    %c0_i32 = arith.constant 0 : i32
    %c0_i32_0 = arith.constant 0 : i32
    return %arg0, %c0_i32 : i32, i32
  }
}

</mosaic_0001>

<bundles_post_ra>
// kernel: tpu_custom_call.1
= control target key start
LH: loop header
LB: loop body
LE: loop exit
PB: predicated region body
PF: predicated region fallthrough
CT: control target
= control target key end

     0   :  { %8 = vsyncpa [#allocation4], 0  ;;  %s150_s0 = inlined_call_operand.<no memory space> [shape: f32[1], index: 0, kind: input, shape index: {}]   ;;  %s151_s1 = inlined_call_operand.hbm [shape: f32[1,2048], index: 1, kind: input, shape index: {}]   ;;  %s152_s2 = inlined_call_operand.hbm [shape: f32[1,2048], index: 2, kind: output, shape index: {}]  }
   0x1   :  { %9 = vsyncpa [#allocation5], 0  ;;  %s106_s9 = smov [#allocation3]   ;;  %s58_s13 = scalar_lea.hbm %s151_s1, 256 }
   0x2   :  { %s18_s10 = sshll.u32 %s106_s9, 4  ;;  %p59_p0 = scmp.ne.s32.totalorder %s151_s1, %s58_s13  ;;  %s19_s10 = int_to_ptr.vmem [resolvable:$true] %s18_s10 }
   0x3   :  { %p62_p1 = scmp.lt.u32.totalorder %s58_s13, %s151_s1 }
   0x5   :  { %p64_p2 = pnand %p62_p1, %p59_p0 }
   0x7   :  { %67 = shalt.err (!%p64_p2)
}
   0x8   :  { %s68_s18 = scalar_lea.vmem %s19_s10, 256  ;;  %p73_p4 = scmp.lt.s32.totalorder %s19_s10, %s19_s10 }
   0x9   :  { %p69_p3 = scmp.ne.s32.totalorder %s19_s10, %s68_s18  ;;  %p74_p5 = scmp.lt.s32.totalorder %s68_s18, %s68_s18 }
   0xb   :  { %p75_p6 = por %p74_p5, %p73_p4 }
   0xd   :  { %p76_p7 = pnand %p75_p6, %p69_p3 }
   0xf   :  { %79 = shalt.err (!%p76_p7)
}
  0x10   :  { %21 = dma.hbm_to_vmem [thread:$0]  %s151_s1, 256, %s19_s10, [#allocation4]  }
  0x11   :  { %102 = dma.done.wait [#allocation4], 256  }
  0x12   :  { %103 = vsyncadd [#allocation4], 4294967040  ;;  %v28_v0 = vstv %s150_s0  ;;  %v26_v1 = vld [vmem:[#allocation3] sm:$0xff]  ;;  %v27_v2 = vld [vmem:[#allocation3 + $0x8] sm:$0xff]  ;;  %s107_s23 = smov [#allocation6]  }
  0x13   :  { %v29_v3 = vmul.f32 %v28_v0, %v26_v1  ;;  %v30_v4 = vmul.f32 %v28_v0, %v27_v2  ;;  %s43_s24 = sshll.u32 %s107_s23, 4  ;;  %s44_s24 = int_to_ptr.vmem [resolvable:$true] %s43_s24 }
  0x14   :  { %s80_s1 = scalar_lea.vmem %s44_s24, 256  ;;  %p85_p9 = scmp.lt.s32.totalorder %s44_s24, %s44_s24 }
  0x15   :  { %v31_v5 = vmul.f32 1.442695, %v29_v3  ;;  %v33_v6 = vmul.f32 1.442695, %v30_v4  ;;  %p81_p8 = scmp.ne.s32.totalorder %s44_s24, %s80_s1  ;;  %p86_p10 = scmp.lt.s32.totalorder %s80_s1, %s80_s1 }
  0x17   :  { %54 = vpow2.f32 %v31_v5  ;;  %p87_p11 = por %p86_p10, %p85_p9 }
  0x18   :  { %56 = vpow2.f32 %v33_v6 }
  0x19   :  { %p88_p12 = pnand %p87_p11, %p81_p8 }
  0x21   :  { %v55_v7 = vpop.eup %54 }
  0x22   :  { %v57_v8 = vpop.eup %56  ;;  %35 = vst [vmem:[#allocation6] sm:$0xff] %v55_v7 }
  0x23   :  { %36 = vst [vmem:[#allocation6 + $0x8] sm:$0xff] %v57_v8 }
  0x24   :  { %91 = shalt.err (!%p88_p12)
}
  0x25   :  { %s92_s26 = scalar_lea.hbm %s152_s2, 256 }
  0x26   :  { %p93_p13 = scmp.ne.s32.totalorder %s152_s2, %s92_s26  ;;  %p96_p0 = scmp.lt.u32.totalorder %s92_s26, %s152_s2 }
  0x28   :  { %p98_p1 = pnand %p96_p0, %p93_p13 }
  0x2a   :  { %101 = shalt.err (!%p98_p1)
}
  0x2b   :  { %46 = dma.vmem_to_hbm [thread:$0]  %s44_s24, 256, %s152_s2, [#allocation5]  }
  0x2c   :  { %104 = dma.done.wait [#allocation5], 256  }
  0x2d   :  { %105 = vsyncadd [#allocation5], 4294967040 }
  0x2e   :  { %50 = vsyncpa [#allocation4], 1 }
  0x2f   :  { %51 = vsyncpa [#allocation5], 1 }

</bundles_post_ra>
